<compile_context>
chip_gen: v6e
topology: v6e:2x2x1
jax: 0.10.0
libtpu: 0.0.40
codegen_flags: <defaults>
</compile_context>

<pallas_src>
import functools

import jax
import jax.numpy as jnp
from jax.experimental import pallas as pl
from jax.experimental.pallas import tpu as pltpu


def _round_up(x, m):
    return ((x + m - 1) // m) * m


def _detect_vmem_capacity_bytes():
    # Queried once at import (outside jit) so tracing never depends on it.
    try:
        return int(pltpu.get_tpu_info().vmem_capacity_bytes)
    except Exception:
        return 128 * 1024 * 1024  # v5e/v6e default


_VMEM_CAP_BYTES = _detect_vmem_capacity_bytes()


# ---------------------------------------------------------------------------
# Kernels
# ---------------------------------------------------------------------------

def mlp_kernel_fused(x_ref, w1_ref, w2_ref, o_ref):
    """Weight-resident path (nh == 1): whole hidden dim in one shot."""
    x = x_ref[...].astype(w1_ref.dtype)                 # cast in-kernel (VPU)
    h = jnp.dot(x, w1_ref[...], preferred_element_type=jnp.float32)
    h = jnp.maximum(h, 0.0)                             # ReLU; dropout = id (eval)
    o_ref[...] = jnp.dot(
        h.astype(w2_ref.dtype), w2_ref[...], preferred_element_type=jnp.float32
    ).astype(o_ref.dtype)


def mlp_kernel_chunked(x_ref, w1_ref, w2_ref, o_ref, acc_ref):
    """Hidden dim chunked over grid axis 1 with an f32 accumulator (P3)."""
    j = pl.program_id(1)

    @pl.when(j == 0)
    def _():
        acc_ref[...] = jnp.zeros_like(acc_ref)

    x = x_ref[...].astype(w1_ref.dtype)
    h = jnp.dot(x, w1_ref[...], preferred_element_type=jnp.float32)
    h = jnp.maximum(h, 0.0)
    acc_ref[...] += jnp.dot(
        h.astype(w2_ref.dtype), w2_ref[...], preferred_element_type=jnp.float32
    )

    @pl.when(j == pl.num_programs(1) - 1)
    def _():
        o_ref[...] = acc_ref[...].astype(o_ref.dtype)


# ---------------------------------------------------------------------------
# Parameter prep (model-load time, not per call)
# ---------------------------------------------------------------------------

def prepare_mlp_params(w1, w2, *, compute_dtype=jnp.float32, lane_pad=128):
    """Transpose PyTorch [out,in] weights to [in,out], zero-pad hidden/output
    dims to lane-dense multiples of 128, cast to the compute dtype."""
    hidden, in_dim = w1.shape
    out_dim, hidden2 = w2.shape
    assert hidden == hidden2
    hidden_p = _round_up(hidden, lane_pad)
    out_p = _round_up(out_dim, lane_pad)
    w1t = (
        jnp.zeros((in_dim, hidden_p), compute_dtype)
        .at[:, :hidden]
        .set(w1.T.astype(compute_dtype))
    )
    w2t = (
        jnp.zeros((hidden_p, out_p), compute_dtype)
        .at[:hidden, :out_dim]
        .set(w2.T.astype(compute_dtype))
    )
    return w1t, w2t, out_dim


# ---------------------------------------------------------------------------
# Tiling planner (all Python ints, resolved at trace time)
# ---------------------------------------------------------------------------

def _plan_tiling(B, in_dim, hidden_p, out_p, x_el, w_el, out_el):
    vmem_cap = _VMEM_CAP_BYTES
    usable = max(
        16 * 1024 * 1024,
        min(int(vmem_cap * 0.8), vmem_cap - 16 * 1024 * 1024),
    )
    two_core = vmem_cap <= 64 * 1024 * 1024  # v7x-like: 2 TCs share the grid

    b_unit = 16 if w_el < 4 else 8  # bf16 packs 16 sublanes per vreg
    b_cap = _round_up(B, b_unit)
    if two_core and B > b_unit:
        # ensure nb >= 2 so both TensorCores get a batch tile
        b_cap = min(b_cap, _round_up((B + 1) // 2, b_unit))

    def fits(tb, th):
        bytes_ = (
            2 * tb * in_dim * x_el                       # x tile (double-buffered)
            + 2 * (in_dim * th + th * out_p) * w_el      # weight blocks (2 bufs)
            + 2 * tb * out_p * out_el                    # out tile (double-buffered)
            + tb * th * 4                                # h intermediate (f32)
        )
        if th != hidden_p:
            bytes_ += tb * out_p * 4                     # f32 accumulator scratch
        return bytes_ <= usable

    tb_set = {c for c in (1024, 512, 256, 128, 64, 32, 16, 8)
              if c % b_unit == 0 and c <= b_cap}
    if b_cap <= 1024:
        tb_set.add(b_cap)
    tb_cands = sorted(tb_set, reverse=True)

    th_cands = sorted(
        {hidden_p // k for k in range(1, hidden_p // 128 + 1)
         if hidden_p % k == 0 and (hidden_p // k) % 128 == 0},
        reverse=True,
    ) or [hidden_p]

    # Pass 1: prefer weight-resident (nh == 1) — weights DMA'd exactly once.
    for tb in tb_cands:
        if fits(tb, hidden_p):
            return tb, hidden_p, usable, b_unit, fits
    # Pass 2: chunk the hidden dim; shrink tile_h before tile_b.
    for tb in tb_cands:
        for th in th_cands[1:]:
            if fits(tb, th):
                return tb, th, usable, b_unit, fits
    return tb_cands[-1], th_cands[-1], usable, b_unit, fits


# ---------------------------------------------------------------------------
# Forward wrapper
# ---------------------------------------------------------------------------

@functools.partial(jax.jit, static_argnames=("out_dim",))
def mlp_forward(x, w1t, w2t, *, out_dim):
    """x: [B, in_dim] (native dtype).  w1t: [in_dim, hidden_p],
    w2t: [hidden_p, out_p] (pre-transposed / padded by prepare_mlp_params)."""
    B, in_dim = x.shape
    in_dim_w, hidden_p = w1t.shape
    hidden_p2, out_p = w2t.shape
    assert in_dim == in_dim_w and hidden_p == hidden_p2

    x_el = jnp.dtype(x.dtype).itemsize
    w_el = jnp.dtype(w1t.dtype).itemsize
    out_dtype = x.dtype
    out_el = jnp.dtype(out_dtype).itemsize

    tile_b, tile_h, vmem_limit, b_unit, fits = _plan_tiling(
        B, in_dim, hidden_p, out_p, x_el, w_el, out_el
    )

    # Avoid the jnp.pad copy of x when a nearby tile_b divides B exactly.
    b_pad = _round_up(B, tile_b)
    if b_pad != B:
        for cand in range(tile_b - b_unit, max(b_unit - 1, tile_b // 2 - 1), -b_unit):
            if cand > 0 and B % cand == 0 and fits(cand, tile_h):
                tile_b, b_pad = cand, B
                break

    x_in = x
    if b_pad != B:
        # TODO(synk): ragged last tile could use a masked store instead of a pad copy.
        x_in = jnp.pad(x, ((0, b_pad - B), (0, 0)))

    nb = b_pad // tile_b
    nh = hidden_p // tile_h

    flops = 2 * b_pad * (in_dim * hidden_p + hidden_p * out_p)
    weight_bytes = (in_dim * hidden_p + hidden_p * out_p) * w_el
    bytes_accessed = (
        b_pad * in_dim * x_el
        + (1 if nh == 1 else nb) * weight_bytes
        + b_pad * out_p * out_el
    )
    cost = pl.CostEstimate(
        flops=flops, transcendentals=0, bytes_accessed=bytes_accessed
    )

    if nh == 1:
        out_padded = pl.pallas_call(
            mlp_kernel_fused,
            out_shape=jax.ShapeDtypeStruct((b_pad, out_p), out_dtype),
            grid_spec=pltpu.PrefetchScalarGridSpec(
                num_scalar_prefetch=0,
                grid=(nb,),
                in_specs=[
                    pl.BlockSpec((tile_b, in_dim), lambda i: (i, 0)),
                    pl.BlockSpec((in_dim, hidden_p), lambda i: (0, 0)),
                    pl.BlockSpec((hidden_p, out_p), lambda i: (0, 0)),
                ],
                out_specs=pl.BlockSpec((tile_b, out_p), lambda i: (i, 0)),
            ),
            compiler_params=pltpu.CompilerParams(
                dimension_semantics=("parallel",),
                vmem_limit_bytes=vmem_limit,
            ),
            cost_estimate=cost,
        )(x_in, w1t, w2t)
    else:
        out_padded = pl.pallas_call(
            mlp_kernel_chunked,
            out_shape=jax.ShapeDtypeStruct((b_pad, out_p), out_dtype),
            grid_spec=pltpu.PrefetchScalarGridSpec(
                num_scalar_prefetch=0,
                grid=(nb, nh),
                in_specs=[
                    pl.BlockSpec((tile_b, in_dim), lambda i, j: (i, 0)),
                    pl.BlockSpec((in_dim, tile_h), lambda i, j: (0, j)),
                    pl.BlockSpec((tile_h, out_p), lambda i, j: (j, 0)),
                ],
                out_specs=pl.BlockSpec((tile_b, out_p), lambda i, j: (i, 0)),
                scratch_shapes=[pltpu.VMEM((tile_b, out_p), jnp.float32)],
            ),
            compiler_params=pltpu.CompilerParams(
                dimension_semantics=("parallel", "arbitrary"),
                vmem_limit_bytes=vmem_limit,
            ),
            cost_estimate=cost,
        )(x_in, w1t, w2t)

    return out_padded[:B, :out_dim]


def mlp_reference(x, w1, w2):
    h = jnp.maximum(x @ w1.T, 0.0)
    return h @ w2.T


if __name__ == "__main__":
    # Small shapes consistent with the module: batch=8, input=32, hidden=64, output=16
    B, IN, HID, OUT = 8, 32, 64, 16

    key = jax.random.PRNGKey(0)
    kx, k1, k2 = jax.random.split(key, 3)

    x = jax.random.normal(kx, (B, IN), dtype=jnp.float32)
    # Deterministic weight init (Kaiming-uniform-like bounds, PyTorch layout [out, in])
    bound1 = 1.0 / (IN ** 0.5)
    bound2 = 1.0 / (HID ** 0.5)
    w1 = jax.random.uniform(k1, (HID, IN), minval=-bound1, maxval=bound1, dtype=jnp.float32)
    w2 = jax.random.uniform(k2, (OUT, HID), minval=-bound2, maxval=bound2, dtype=jnp.float32)

    y_ref = mlp_reference(x, w1, w2)

    # f32 compute path (tight check).
    w1t_f32, w2t_f32, out_dim = prepare_mlp_params(w1, w2, compute_dtype=jnp.float32)
    y = mlp_forward(x, w1t_f32, w2t_f32, out_dim=out_dim)
    y = jax.block_until_ready(y)
    assert y.shape == (B, OUT)
    assert jnp.allclose(y, y_ref, atol=1e-5, rtol=1e-4)

    # bf16 operands, f32 accumulation (loose check); x stays f32 in HBM.
    w1t_bf16, w2t_bf16, _ = prepare_mlp_params(w1, w2, compute_dtype=jnp.bfloat16)
    y_bf16 = mlp_forward(x, w1t_bf16, w2t_bf16, out_dim=out_dim)
    y_bf16 = jax.block_until_ready(y_bf16)
    assert y_bf16.shape == (B, OUT)
    assert jnp.allclose(y_bf16, y_ref, atol=5e-2, rtol=5e-2)

    print("KERNEL_OK")
</pallas_src>

<mosaic_0001>
module attributes {stable_mosaic.version = 11 : i64} {
  func.func @mlp_kernel_fused(%arg0: i32, %arg1: memref<8x32xf32, #tpu.memory_space<vmem>>, %arg2: memref<32x128xf32, #tpu.memory_space<vmem>>, %arg3: memref<128x128xf32, #tpu.memory_space<vmem>>, %arg4: memref<8x128xf32, #tpu.memory_space<vmem>>) attributes {dimension_semantics = [#tpu.dimension_semantics<parallel>], iteration_bounds = array<i64: 1>, scalar_prefetch = 0 : i64, scratch_operands = 0 : i64, tpu.core_type = #tpu.core_type<tc>, window_params = [{transform_indices = @transform_0, window_bounds = array<i64: 8, 32>}, {pipeline_mode = #tpu.pipeline_mode<synchronous>, transform_indices = @transform_1, window_bounds = array<i64: 32, 128>}, {pipeline_mode = #tpu.pipeline_mode<synchronous>, transform_indices = @transform_2, window_bounds = array<i64: 128, 128>}, {transform_indices = @transform_3, window_bounds = array<i64: 8, 128>}]} {
    %c0 = arith.constant 0 : index
    %c0_0 = arith.constant 0 : index
    %0 = vector.load %arg1[%c0, %c0_0] : memref<8x32xf32, #tpu.memory_space<vmem>>, vector<8x32xf32>
    %c0_1 = arith.constant 0 : index
    %c0_2 = arith.constant 0 : index
    %1 = vector.load %arg2[%c0_1, %c0_2] : memref<32x128xf32, #tpu.memory_space<vmem>>, vector<32x128xf32>
    %cst = arith.constant dense<0.000000e+00> : vector<8x128xf32>
    %2 = tpu.matmul %0, %1, %cst {dimension_numbers = #tpu.dot_dimension_numbers<[1], [0], [0], [1], [0, 0, 1, 1], [], []>} : vector<8x32xf32>, vector<32x128xf32>, vector<8x128xf32> -> vector<8x128xf32>
    %cst_3 = arith.constant 0.000000e+00 : f32
    %3 = vector.broadcast %cst_3 : f32 to vector<8x128xf32>
    %4 = arith.maximumf %2, %3 : vector<8x128xf32>
    %c0_4 = arith.constant 0 : index
    %c0_5 = arith.constant 0 : index
    %5 = vector.load %arg3[%c0_4, %c0_5] : memref<128x128xf32, #tpu.memory_space<vmem>>, vector<128x128xf32>
    %cst_6 = arith.constant dense<0.000000e+00> : vector<8x128xf32>
    %6 = tpu.matmul %4, %5, %cst_6 {dimension_numbers = #tpu.dot_dimension_numbers<[1], [0], [0], [1], [0, 0, 1, 1], [], []>} : vector<8x128xf32>, vector<128x128xf32>, vector<8x128xf32> -> vector<8x128xf32>
    %c0_7 = arith.constant 0 : index
    %c0_8 = arith.constant 0 : index
    %7 = vector.load %arg4[%c0_7, %c0_8] : memref<8x128xf32, #tpu.memory_space<vmem>>, vector<8x128xf32>
    tpu.vector_store %arg4[%c0_7, %c0_8], %6 {strides = array<i32>} : memref<8x128xf32, #tpu.memory_space<vmem>>, vector<8x128xf32>,
    return
  }
  func.func @transform_0(%arg0: i32) -> (i32, i32) {
    %c0_i32 = arith.constant 0 : i32
    %c0_i32_0 = arith.constant 0 : i32
    return %arg0, %c0_i32 : i32, i32
  }
  func.func @transform_1(%arg0: i32) -> (i32, i32) {
    %c0_i32 = arith.constant 0 : i32
    %c0_i32_0 = arith.constant 0 : i32
    %c0_i32_1 = arith.constant 0 : i32
    return %c0_i32, %c0_i32_0 : i32, i32
  }
  func.func @transform_2(%arg0: i32) -> (i32, i32) {
    %c0_i32 = arith.constant 0 : i32
    %c0_i32_0 = arith.constant 0 : i32
    %c0_i32_1 = arith.constant 0 : i32
    return %c0_i32, %c0_i32_0 : i32, i32
  }
  func.func @transform_3(%arg0: i32) -> (i32, i32) {
    %c0_i32 = arith.constant 0 : i32
    %c0_i32_0 = arith.constant 0 : i32
    return %arg0, %c0_i32 : i32, i32
  }
}

</mosaic_0001>

<bundles_post_ra>
// kernel: mlp_forward.1
= control target key start
LH: loop header
LB: loop body
LE: loop exit
PB: predicated region body
PF: predicated region fallthrough
CT: control target
= control target key end

     0   :  { %8 = vsyncpa [#allocation3], 0  ;;  %s462_s0 = inlined_call_operand.hbm [shape: f32[8,32], index: 0, kind: input, shape index: {}]   ;;  %s463_s1 = inlined_call_operand.hbm [shape: f32[32,128], index: 1, kind: input, shape index: {}]   ;;  %s464_s2 = inlined_call_operand.hbm [shape: f32[128,128], index: 2, kind: input, shape index: {}]   ;;  %s465_s3 = inlined_call_operand.hbm [shape: f32[8,128], index: 3, kind: output, shape index: {}]  }
   0x1   :  { %9 = vsyncpa [#allocation6], 0 }
   0x2   :  { %10 = vsyncpa [#allocation4], 0  ;;  %s400_s12 = smov [#allocation5]  }
   0x3   :  { %s26_s13 = sshll.u32 %s400_s12, 4  ;;  %s27_s13 = int_to_ptr.vmem [resolvable:$true] %s26_s13 }
   0x4   :  { %s322_s14 = scalar_lea.vmem %s27_s13, 512  ;;  %p327_p1 = scmp.lt.s32.totalorder %s27_s13, %s27_s13 }
   0x5   :  { %p323_p0 = scmp.ne.s32.totalorder %s27_s13, %s322_s14  ;;  %p328_p2 = scmp.lt.s32.totalorder %s322_s14, %s322_s14 }
   0x7   :  { %p329_p3 = por %p328_p2, %p327_p1 }
   0x9   :  { %p330_p4 = pnand %p329_p3, %p323_p0 }
   0xb   :  { %333 = shalt.err (!%p330_p4)
}
   0xc   :  { %s401_s15 = smov 128   ;;  %s402_s16 = smov 8  }
   0xd   :  { %32 = dma.hbm_to_vmem [thread:$0]  %s463_s1, 512, %s27_s13, [#allocation6], %s401_s15, %s401_s15, %s402_s16  }
   0xe   :  { %s403_s19 = smov [#allocation2]   ;;  %s404_s21 = smov [#allocation7]  }
   0xf   :  { %s17_s20 = sshll.u32 %s403_s19, 4  ;;  %s38_s22 = sshll.u32 %s404_s21, 4  ;;  %s18_s20 = int_to_ptr.vmem [resolvable:$true] %s17_s20  ;;  %s39_s22 = int_to_ptr.vmem [resolvable:$true] %s38_s22 }
  0x10   :  { %s342_s23 = scalar_lea.vmem %s18_s20, 128  ;;  %p347_p6 = scmp.lt.s32.totalorder %s18_s20, %s18_s20 }
  0x11   :  { %p343_p5 = scmp.ne.s32.totalorder %s18_s20, %s342_s23  ;;  %p348_p7 = scmp.lt.s32.totalorder %s342_s23, %s342_s23 }
  0x13   :  { %p349_p8 = por %p348_p7, %p347_p6 }
  0x15   :  { %p350_p9 = pnand %p349_p8, %p343_p5 }
  0x17   :  { %353 = shalt.err (!%p350_p9)
}
  0x18   :  { %20 = dma.hbm_to_vmem [thread:$0]  %s462_s0, 128, %s18_s20, [#allocation3]  }
  0x19   :  { %s362_s26 = scalar_lea.vmem %s39_s22, 2048  ;;  %p367_p11 = scmp.lt.s32.totalorder %s39_s22, %s39_s22 }
  0x1a   :  { %p363_p10 = scmp.ne.s32.totalorder %s39_s22, %s362_s26  ;;  %p368_p12 = scmp.lt.s32.totalorder %s362_s26, %s362_s26 }
  0x1c   :  { %p369_p13 = por %p368_p12, %p367_p11 }
  0x1e   :  { %p370_p0 = pnand %p369_p13, %p363_p10 }
  0x20   :  { %373 = shalt.err (!%p370_p0)
}
  0x21   :  { %44 = dma.hbm_to_vmem [thread:$0]  %s464_s2, 2048, %s39_s22, [#allocation6], %s401_s15, %s401_s15, %s402_s16  }
  0x22   :  { %394 = dma.done.wait [#allocation3], 128  }
  0x23   :  { %395 = vsyncadd [#allocation3], 4294967168 }
  0x24   :  { %396 = dma.done.wait [#allocation6], 2560  }
  0x25   :  { %397 = vsyncadd [#allocation6], 4294964736  ;;  %v405_v0 = vmov 0.0   ;;  %vm406_vm0 = vmmov 0   ;;  %v58_v1 = vld [vmem:[#allocation5 + $0x18] sm:$0xff]  ;;  %v57_v2 = vld [vmem:[#allocation5 + $0x10] sm:$0xff] }
  0x26   :  { %260 = vmatprep.subr.mxu0 %v405_v0  ;;  %268 = vmatprep.mubr.msk.f32.mxu0 %vm406_vm0, %v405_v0  ;;  %v149_v3 = vld [vmem:[#allocation7 + $0x78] sm:$0xff]  ;;  %v56_v4 = vld [vmem:[#allocation5 + $0x8] sm:$0xff]  ;;  %v148_v5 = vld [vmem:[#allocation7 + $0x70] sm:$0xff]  ;;  %vm59_vm1 = vcmask 261120   ;;  %s407_s0 = smov [#allocation8]  }
  0x27   :  { %271 = vmatprep.subr.mxu1 %v405_v0  ;;  %303 = vmatprep.mubr.msk.f32.mxu1 %vm406_vm0, %v405_v0  ;;  %v147_v6 = vld [vmem:[#allocation7 + $0x68] sm:$0xff]  ;;  %v55_v7 = vld [vmem:[#allocation5] sm:$0xff]  ;;  %v54_v8 = vld [vmem:[#allocation2] sm:$0xff]  ;;  %s227_s2 = sshll.u32 %s407_s0, 4  ;;  %s228_s2 = int_to_ptr.vmem [resolvable:$true] %s227_s2 }
  0x28   :  { %261 = vmatpush3.msra.mxu0 %v58_v1  ;;  %272 = vmatpush3.msra.mxu1 %v149_v3  ;;  %v146_v9 = vld [vmem:[#allocation7 + $0x60] sm:$0xff]  ;;  %v145_v10 = vld [vmem:[#allocation7 + $0x58] sm:$0xff]  ;;  %v144_v11 = vld [vmem:[#allocation7 + $0x50] sm:$0xff]  ;;  %s374_s28 = scalar_lea.vmem %s228_s2, 128  ;;  %p379_p2 = scmp.lt.s32.totalorder %s228_s2, %s228_s2 }
  0x29   :  { %262 = vmatprep.subr.mxu0 %v405_v0  ;;  %273 = vmatprep.subr.mxu1 %v405_v0  ;;  %v143_v12 = vld [vmem:[#allocation7 + $0x48] sm:$0xff]  ;;  %v142_v13 = vld [vmem:[#allocation7 + $0x40] sm:$0xff]  ;;  %v141_v14 = vld [vmem:[#allocation7 + $0x38] sm:$0xff]  ;;  %p375_p1 = scmp.ne.s32.totalorder %s228_s2, %s374_s28  ;;  %p380_p3 = scmp.lt.s32.totalorder %s374_s28, %s374_s28 }
  0x2a   :  { %263 = vmatpush3.msra.mxu0 %v57_v2  ;;  %274 = vmatpush3.msra.mxu1 %v148_v5  ;;  %v140_v15 = vld [vmem:[#allocation7 + $0x30] sm:$0xff]  ;;  %v139_v16 = vld [vmem:[#allocation7 + $0x28] sm:$0xff]  ;;  %v138_v17 = vld [vmem:[#allocation7 + $0x20] sm:$0xff] }
  0x2b   :  { %264 = vmatprep.subr.mxu0 %v405_v0  ;;  %275 = vmatprep.subr.mxu1 %v405_v0  ;;  %v137_v18 = vld [vmem:[#allocation7 + $0x18] sm:$0xff]  ;;  %v136_v19 = vld [vmem:[#allocation7 + $0x10] sm:$0xff]  ;;  %v135_v20 = vld [vmem:[#allocation7 + $0x8] sm:$0xff]  ;;  %p381_p4 = por %p380_p3, %p379_p2 }
  0x2c   :  { %265 = vmatpush3.msra.mxu0 %v56_v4  ;;  %276 = vmatpush3.msra.mxu1 %v147_v6  ;;  %v134_v21 = vld [vmem:[#allocation7] sm:$0xff] }
  0x2d   :  { %266 = vmatprep.subr.mxu0 %v405_v0  ;;  %277 = vmatprep.subr.mxu1 %v405_v0  ;;  %p382_p5 = pnand %p381_p4, %p375_p1 }
  0x2e   :  { %267 = vmatpush3.msra.mxu0 %v55_v7  ;;  %278 = vmatpush3.msra.mxu1 %v146_v9 }
  0x2f   :  { %269 = vmatmul.mubr.msk.f32.vlgmr.msra.gmra.mxu0 %vm59_vm1, %v54_v8  ;;  %279 = vmatprep.subr.mxu1 %v405_v0 }
  0x30   :  { %280 = vmatpush3.msra.mxu1 %v145_v10 }
  0x31   :  { %281 = vmatprep.subr.mxu1 %v405_v0 }
  0x32   :  { %282 = vmatpush3.msra.mxu1 %v144_v11 }
  0x33   :  { %283 = vmatprep.subr.mxu1 %v405_v0 }
  0x34   :  { %284 = vmatpush3.msra.mxu1 %v143_v12 }
  0x35   :  { %285 = vmatprep.subr.mxu1 %v405_v0 }
  0x36   :  { %286 = vmatpush3.msra.mxu1 %v142_v13 }
  0x37   :  { %287 = vmatprep.subr.mxu1 %v405_v0 }
  0x38   :  { %288 = vmatpush3.msra.mxu1 %v141_v14 }
  0x39   :  { %289 = vmatprep.subr.mxu1 %v405_v0 }
  0x3a   :  { %290 = vmatpush3.msra.mxu1 %v140_v15 }
  0x3b   :  { %291 = vmatprep.subr.mxu1 %v405_v0 }
  0x3c   :  { %292 = vmatpush3.msra.mxu1 %v139_v16 }
  0x3d   :  { %293 = vmatprep.subr.mxu1 %v405_v0 }
  0x3e   :  { %294 = vmatpush3.msra.mxu1 %v138_v17 }
  0x3f   :  { %295 = vmatprep.subr.mxu1 %v405_v0 }
  0x40   :  { %296 = vmatpush3.msra.mxu1 %v137_v18 }
  0x41   :  { %297 = vmatprep.subr.mxu1 %v405_v0 }
  0x42   :  { %298 = vmatpush3.msra.mxu1 %v136_v19 }
  0x43   :  { %299 = vmatprep.subr.mxu1 %v405_v0 }
  0x44   :  { %300 = vmatpush3.msra.mxu1 %v135_v20 }
  0x45   :  { %301 = vmatprep.subr.mxu1 %v405_v0 }
  0x46   :  { %302 = vmatpush3.msra.mxu1 %v134_v21 }
  0xef   :  { %v129_v22 = vpop.f32.mrf.mxu0 }
  0xf0   :  { %v133_v23 = vmax.f32 %v129_v22, 0.0 }
  0xf1   :  { %v270_v24 = vpop.f32.mrf.mxu0 }
  0xf2   :  { %304 = vmatmul.mubr.f32.vlgmr.msra.gmra.mxu1 %v133_v23 }
 0x1b2   :  { %v216_v25 = vpop.f32.mrf.mxu1 }
 0x1b3   :  { %220 = vst [vmem:[#allocation8] sm:$0xff] %v216_v25 }
 0x1b4   :  { %v305_v26 = vpop.f32.mrf.mxu1 }
 0x1b5   :  { %385 = shalt.err (!%p382_p5)
}
 0x1b6   :  { %230 = dma.vmem_to_hbm [thread:$0]  %s228_s2, 128, %s465_s3, [#allocation4]  }
 0x1b7   :  { %398 = dma.done.wait [#allocation4], 128  }
 0x1b8   :  { %399 = vsyncadd [#allocation4], 4294967168 }
 0x1b9   :  { %234 = vsyncpa [#allocation3], 1 }
 0x1ba   :  { %235 = vsyncpa [#allocation6], 1 }
 0x1bb   :  { %236 = vsyncpa [#allocation4], 1 }

</bundles_post_ra>
